<compile_context>
chip_gen: v5e
topology: v5e:2x2
jax: 0.10.0
libtpu: 0.0.40
codegen_flags: <defaults>
</compile_context>

<pallas_src>
import functools

import jax
import jax.numpy as jnp
from jax.experimental import pallas as pl
from jax.experimental.pallas import tpu as pltpu

TEMPERATURE = 0.1                 # partial(td.RelaxedBernoulli, temperature=0.1)
INV_TEMPERATURE = 1.0 / TEMPERATURE


def _round_up(n: int, m: int) -> int:
    return ((n + m - 1) // m) * m


def vdrop_linear_kernel(logits_ref, x_ref, w_ref, noise_ref, b_ref, o_ref):
    """Fused relaxed-Bernoulli input-dropout + Linear, K-tiled, output-resident accumulation.

    logits_ref : SMEM (1,)      f32  -- self.input_logits (shared scalar)
    x_ref      : VMEM (tm, tk)  bf16 -- input tile
    w_ref      : VMEM (tn, tk)  bf16 -- nn.Linear weight tile, native (OUT, IN) layout
    noise_ref  : VMEM (tm, 1)   f32  -- uniform(0,1) noise, one per batch row
    b_ref      : VMEM (1, tn)   f32  -- Linear bias tile
    o_ref      : VMEM (tm, tn)  f32  -- output tile, doubles as the K accumulator
    """
    k = pl.program_id(2)

    # Steady state: pure MXU work (bf16 operands streamed as-is, f32 accumulation).
    # Contract last dim of x with last dim of W  ==  x @ W.T  (no weight transpose).
    partial_acc = jax.lax.dot_general(
        x_ref[...], w_ref[...],
        dimension_numbers=(((1,), (1,)), ((), ())),
        preferred_element_type=jnp.float32,
    )

    @pl.when(k == 0)
    def _first():
        o_ref[...] = partial_acc           # direct assign: no zero-fill + add

    @pl.when(k != 0)
    def _accumulate():
        o_ref[...] += partial_acc

    @pl.when(k == pl.num_programs(2) - 1)
    def _finalize():
        # mask is a per-row scalar, so (x*mask)@W.T == (x@W.T)*mask: apply it once
        # to the f32 accumulator together with the bias (hidden under the MXU drain).
        u = jnp.clip(noise_ref[...], 1e-6, 1.0 - 1e-6)               # (tm, 1) f32
        logistic = jnp.log(u) - jnp.log(1.0 - u)
        mask = jax.nn.sigmoid((logistic - logits_ref[0]) * INV_TEMPERATURE)
        # TODO(synk): force_quantize=True would round `mask` here (straight-through in bwd).
        o_ref[...] = o_ref[...] * mask + b_ref[...]


def variational_dropout_linear(x, noise, input_logits, weight, bias, *,
                               tm=512, tn=1024, tk=1024,
                               compute_dtype=jnp.bfloat16):
    """x: (B, IN); noise: (B, 1); input_logits: (1,); weight: (OUT, IN); bias: (OUT,).

    x and weight are cast to `compute_dtype` (bf16) here so the kernel streams
    half the HBM bytes; in a real model the weight cast/pad belongs at
    parameter-init time, outside the hot path.
    """
    B, IN = x.shape
    OUT, IN_w = weight.shape
    assert IN_w == IN

    # Tile sizes: second-minor multiples of 8, minor multiples of 128 (capped by dims).
    tm = min(tm, _round_up(B, 8))
    tn = min(tn, _round_up(OUT, 128))
    tk = min(tk, _round_up(IN, 128))
    Bp, OUTp, INp = _round_up(B, tm), _round_up(OUT, tn), _round_up(IN, tk)

    def maybe_pad2(a, rows, cols):
        if a.shape == (rows, cols):
            return a
        return jnp.pad(a, ((0, rows - a.shape[0]), (0, cols - a.shape[1])))

    # bf16 operand streams prepared OUTSIDE the kernel; pads only fire when misaligned.
    x_p = maybe_pad2(x.astype(compute_dtype), Bp, INp)       # zero K-padding contributes 0
    w_p = maybe_pad2(weight.astype(compute_dtype), OUTp, INp)  # keep native (OUT, IN): no HBM transpose
    n_p = maybe_pad2(noise.astype(jnp.float32), Bp, 1)
    b_p = maybe_pad2(bias.reshape(1, OUT).astype(jnp.float32), 1, OUTp)
    logits = input_logits.astype(jnp.float32)

    grid = (Bp // tm, OUTp // tn, INp // tk)

    itemsize = jnp.dtype(compute_dtype).itemsize
    out = pl.pallas_call(
        vdrop_linear_kernel,
        out_shape=jax.ShapeDtypeStruct((Bp, OUTp), jnp.float32),
        grid_spec=pltpu.PrefetchScalarGridSpec(
            num_scalar_prefetch=0,
            grid=grid,
            in_specs=[
                pl.BlockSpec(memory_space=pltpu.MemorySpace.SMEM),      # input_logits (1,)
                pl.BlockSpec((tm, tk), lambda i, j, k: (i, k)),         # x (bf16)
                pl.BlockSpec((tn, tk), lambda i, j, k: (j, k)),         # weight (OUT, IN) bf16
                pl.BlockSpec((tm, 1), lambda i, j, k: (i, 0)),          # noise (per-row)
                pl.BlockSpec((1, tn), lambda i, j, k: (0, j)),          # bias
            ],
            out_specs=pl.BlockSpec((tm, tn), lambda i, j, k: (i, j)),   # resident across k
        ),
        compiler_params=pltpu.CompilerParams(
            dimension_semantics=("parallel", "parallel", "arbitrary"),
            vmem_limit_bytes=64 * 1024 * 1024,
        ),
        cost_estimate=pl.CostEstimate(
            flops=2 * Bp * INp * OUTp,
            transcendentals=4 * Bp * (OUTp // tn),
            bytes_accessed=((Bp // tm) * w_p.size * itemsize   # W re-streamed once per M-tile
                            + (OUTp // tn) * x_p.size * itemsize
                            + Bp * OUTp * 4 + Bp * 4 + OUTp * 4),
        ),
    )(logits, x_p, w_p, n_p, b_p)

    return out[:B, :OUT]


def reference_forward_f32(x, noise, input_logits, weight, bias):
    """Pure-JAX f32 mirror of the PyTorch forward (batch_mask path, input dropout)."""
    logistic = jnp.log(noise) - jnp.log(1.0 - noise)
    mask = jax.nn.sigmoid((-input_logits[0] + logistic) / TEMPERATURE)
    return (x * mask) @ weight.T + bias


def reference_forward_bf16(x, noise, input_logits, weight, bias):
    """Reference using the same bf16 MXU operands / f32 accumulation / post-mask as the kernel."""
    logistic = jnp.log(noise) - jnp.log(1.0 - noise)
    mask = jax.nn.sigmoid((-input_logits[0] + logistic) / TEMPERATURE)
    y = jax.lax.dot_general(
        x.astype(jnp.bfloat16), weight.astype(jnp.bfloat16),
        dimension_numbers=(((1,), (1,)), ((), ())),
        preferred_element_type=jnp.float32,
    )
    return y * mask + bias


if __name__ == "__main__":
    key = jax.random.PRNGKey(0)
    k_x, k_w, k_b, k_u = jax.random.split(key, 4)

    # Small, tile-aligned shapes (no padding fires): B multiple of 8, OUT multiple
    # of 128 (lane-dense stores), IN sized to exercise the K-reduction grid axis.
    B, IN_F, OUT_F = 16, 256, 128

    # nn.Linear(IN_F, OUT_F) parameters in native (OUT, IN) layout.
    weight = jax.random.normal(k_w, (OUT_F, IN_F), jnp.float32) * 0.05
    bias = jax.random.normal(k_b, (OUT_F,), jnp.float32) * 0.01
    # dropout_initialization = 0.5 -> logit_init = -log(1/0.5 - 1) = 0.0, shared (1,)
    input_logits = jnp.zeros((1,), jnp.float32)

    # Inputs and per-row uniform noise for the relaxed-Bernoulli sample.
    x = jax.random.normal(k_x, (B, IN_F), jnp.float32)
    noise = jax.random.uniform(k_u, (B, 1), jnp.float32, minval=1e-6, maxval=1.0 - 1e-6)

    # Small tiles here so the (M, N, K) grid (incl. the K accumulation path) is exercised.
    out = variational_dropout_linear(x, noise, input_logits, weight, bias,
                                     tm=8, tn=128, tk=128)
    out = jax.block_until_ready(out)
    assert out.shape == (B, OUT_F)

    # Tight check vs a reference using the same bf16 MXU operands.
    ref_bf16 = reference_forward_bf16(x, noise, input_logits, weight, bias)
    assert jnp.allclose(out, ref_bf16, atol=2e-3, rtol=2e-3), "kernel != bf16-matched reference"

    # Loose check vs pure-f32 module semantics (only bf16 operand rounding differs).
    ref_f32 = reference_forward_f32(x, noise, input_logits, weight, bias)
    assert jnp.allclose(out, ref_f32, atol=5e-2, rtol=5e-2), "kernel != f32 module reference"

    # Also run once with the production-default (large) tiles to confirm they lower.
    out_big = jax.block_until_ready(
        variational_dropout_linear(x, noise, input_logits, weight, bias))
    assert jnp.allclose(out_big, ref_bf16, atol=2e-3, rtol=2e-3)

    print("KERNEL_OK")
</pallas_src>

<mosaic_0001>
module attributes {stable_mosaic.version = 11 : i64} {
  func.func @vdrop_linear_kernel(%arg0: i32, %arg1: i32, %arg2: i32, %arg3: memref<1xf32, #tpu.memory_space<smem>>, %arg4: memref<8x128xbf16, #tpu.memory_space<vmem>>, %arg5: memref<128x128xbf16, #tpu.memory_space<vmem>>, %arg6: memref<8x1xf32, #tpu.memory_space<vmem>>, %arg7: memref<1x128xf32, #tpu.memory_space<vmem>>, %arg8: memref<8x128xf32, #tpu.memory_space<vmem>>) attributes {dimension_semantics = [#tpu.dimension_semantics<parallel>, #tpu.dimension_semantics<parallel>, #tpu.dimension_semantics<arbitrary>], iteration_bounds = array<i64: 2, 1, 2>, scalar_prefetch = 0 : i64, scratch_operands = 0 : i64, tpu.core_type = #tpu.core_type<tc>, window_params = [{transform_indices = @transform_0, window_bounds = array<i64: 1>}, {transform_indices = @transform_1, window_bounds = array<i64: 8, 128>}, {transform_indices = @transform_2, window_bounds = array<i64: 128, 128>}, {transform_indices = @transform_3, window_bounds = array<i64: 8, 1>}, {transform_indices = @transform_4, window_bounds = array<i64: 1, 128>}, {transform_indices = @transform_5, window_bounds = array<i64: 8, 128>}]} {
    %c0 = arith.constant 0 : index
    %c0_0 = arith.constant 0 : index
    %0 = vector.load %arg4[%c0, %c0_0] : memref<8x128xbf16, #tpu.memory_space<vmem>>, vector<8x128xbf16>
    %c0_1 = arith.constant 0 : index
    %c0_2 = arith.constant 0 : index
    %1 = vector.load %arg5[%c0_1, %c0_2] : memref<128x128xbf16, #tpu.memory_space<vmem>>, vector<128x128xbf16>
    %cst = arith.constant dense<0.000000e+00> : vector<8x128xf32>
    %2 = tpu.matmul %0, %1, %cst {dimension_numbers = #tpu.dot_dimension_numbers<[1], [1], [0], [0], [0, 0, 1, 0], [], []>} : vector<8x128xbf16>, vector<128x128xbf16>, vector<8x128xf32> -> vector<8x128xf32>
    %c0_i32 = arith.constant 0 : i32
    %3 = arith.cmpi eq, %arg2, %c0_i32 : i32
    %4 = arith.extui %3 : i1 to i32
    %c0_i32_3 = arith.constant 0 : i32
    %5 = arith.cmpi ne, %4, %c0_i32_3 : i32
    scf.if %5 {
      %c0_7 = arith.constant 0 : index
      %c0_8 = arith.constant 0 : index
      %12 = vector.load %arg8[%c0_7, %c0_8] : memref<8x128xf32, #tpu.memory_space<vmem>>, vector<8x128xf32>
      tpu.vector_store %arg8[%c0_7, %c0_8], %2 {strides = array<i32>} : memref<8x128xf32, #tpu.memory_space<vmem>>, vector<8x128xf32>,
    } else {
    }
    %c0_i32_4 = arith.constant 0 : i32
    %6 = arith.cmpi ne, %arg2, %c0_i32_4 : i32
    %7 = arith.extui %6 : i1 to i32
    %c0_i32_5 = arith.constant 0 : i32
    %8 = arith.cmpi ne, %7, %c0_i32_5 : i32
    scf.if %8 {
      %c0_7 = arith.constant 0 : index
      %c0_8 = arith.constant 0 : index
      %12 = vector.load %arg8[%c0_7, %c0_8] : memref<8x128xf32, #tpu.memory_space<vmem>>, vector<8x128xf32>
      %13 = arith.addf %12, %2 : vector<8x128xf32>
      %c0_9 = arith.constant 0 : index
      %c0_10 = arith.constant 0 : index
      %14 = vector.load %arg8[%c0_9, %c0_10] : memref<8x128xf32, #tpu.memory_space<vmem>>, vector<8x128xf32>
      tpu.vector_store %arg8[%c0_9, %c0_10], %13 {strides = array<i32>} : memref<8x128xf32, #tpu.memory_space<vmem>>, vector<8x128xf32>,
    } else {
    }
    %c1_i32 = arith.constant 1 : i32
    %9 = arith.cmpi eq, %arg2, %c1_i32 : i32
    %10 = arith.extui %9 : i1 to i32
    %c0_i32_6 = arith.constant 0 : i32
    %11 = arith.cmpi ne, %10, %c0_i32_6 : i32
    scf.if %11 {
      %c0_7 = arith.constant 0 : index
      %c0_8 = arith.constant 0 : index
      %12 = vector.load %arg6[%c0_7, %c0_8] : memref<8x1xf32, #tpu.memory_space<vmem>>, vector<8x1xf32>
      %cst_9 = arith.constant 9.99999997E-7 : f32
      %cst_10 = arith.constant 0.999998986 : f32
      %13 = vector.broadcast %cst_9 : f32 to vector<8x1xf32>
      %14 = arith.maximumf %13, %12 : vector<8x1xf32>
      %15 = vector.broadcast %cst_10 : f32 to vector<8x1xf32>
      %16 = arith.minimumf %15, %14 : vector<8x1xf32>
      %17 = math.log %16 : vector<8x1xf32>
      %cst_11 = arith.constant 1.000000e+00 : f32
      %18 = vector.broadcast %cst_11 : f32 to vector<8x1xf32>
      %19 = arith.subf %18, %16 : vector<8x1xf32>
      %20 = math.log %19 : vector<8x1xf32>
      %21 = arith.subf %17, %20 : vector<8x1xf32>
      %c0_12 = arith.constant 0 : index
      %22 = memref.load %arg3[%c0_12] : memref<1xf32, #tpu.memory_space<smem>>
      %23 = vector.broadcast %22 : f32 to vector<8x1xf32>
      %24 = arith.subf %21, %23 : vector<8x1xf32>
      %cst_13 = arith.constant 1.000000e+01 : f32
      %25 = vector.broadcast %cst_13 : f32 to vector<8x1xf32>
      %26 = arith.mulf %24, %25 : vector<8x1xf32>
      %27 = arith.negf %26 : vector<8x1xf32>
      %28 = math.exp %27 : vector<8x1xf32>
      %cst_14 = arith.constant 1.000000e+00 : f32
      %29 = vector.broadcast %cst_14 : f32 to vector<8x1xf32>
      %30 = arith.addf %29, %28 : vector<8x1xf32>
      %31 = arith.divf %29, %30 : vector<8x1xf32>
      %c0_15 = arith.constant 0 : index
      %c0_16 = arith.constant 0 : index
      %32 = vector.load %arg8[%c0_15, %c0_16] : memref<8x128xf32, #tpu.memory_space<vmem>>, vector<8x128xf32>
      %33 = vector.broadcast %31 : vector<8x1xf32> to vector<8x128xf32>
      %34 = arith.mulf %32, %33 : vector<8x128xf32>
      %c0_17 = arith.constant 0 : index
      %c0_18 = arith.constant 0 : index
      %35 = vector.load %arg7[%c0_17, %c0_18] : memref<1x128xf32, #tpu.memory_space<vmem>>, vector<1x128xf32>
      %36 = vector.broadcast %35 : vector<1x128xf32> to vector<8x128xf32>
      %37 = arith.addf %34, %36 : vector<8x128xf32>
      %c0_19 = arith.constant 0 : index
      %c0_20 = arith.constant 0 : index
      %38 = vector.load %arg8[%c0_19, %c0_20] : memref<8x128xf32, #tpu.memory_space<vmem>>, vector<8x128xf32>
      tpu.vector_store %arg8[%c0_19, %c0_20], %37 {strides = array<i32>} : memref<8x128xf32, #tpu.memory_space<vmem>>, vector<8x128xf32>,
    } else {
    }
    return
  }
  func.func @transform_0(%arg0: i32, %arg1: i32, %arg2: i32) -> i32 {
    %c0_i32 = arith.constant 0 : i32
    %c0_i32_0 = arith.constant 0 : i32
    return %c0_i32 : i32
  }
  func.func @transform_1(%arg0: i32, %arg1: i32, %arg2: i32) -> (i32, i32) {
    %c0_i32 = arith.constant 0 : i32
    return %arg0, %arg2 : i32, i32
  }
  func.func @transform_2(%arg0: i32, %arg1: i32, %arg2: i32) -> (i32, i32) {
    %c0_i32 = arith.constant 0 : i32
    return %arg1, %arg2 : i32, i32
  }
  func.func @transform_3(%arg0: i32, %arg1: i32, %arg2: i32) -> (i32, i32) {
    %c0_i32 = arith.constant 0 : i32
    %c0_i32_0 = arith.constant 0 : i32
    return %arg0, %c0_i32 : i32, i32
  }
  func.func @transform_4(%arg0: i32, %arg1: i32, %arg2: i32) -> (i32, i32) {
    %c0_i32 = arith.constant 0 : i32
    %c0_i32_0 = arith.constant 0 : i32
    return %c0_i32, %arg1 : i32, i32
  }
  func.func @transform_5(%arg0: i32, %arg1: i32, %arg2: i32) -> (i32, i32) {
    %c0_i32 = arith.constant 0 : i32
    return %arg0, %arg1 : i32, i32
  }
}

</mosaic_0001>

<bundles_post_ra>
// kernel: tpu_custom_call.1
= control target key start
LH: loop header
LB: loop body
LE: loop exit
PB: predicated region body
PF: predicated region fallthrough
CT: control target
= control target key end

     0   :  { %s1183_s0 = inlined_call_operand.<no memory space> [shape: f32[1], index: 0, kind: input, shape index: {}]   ;;  %s1184_s1 = inlined_call_operand.vmem [shape: bf16[16,256], index: 1, kind: input, shape index: {}]   ;;  %s1185_s2 = inlined_call_operand.hbm [shape: bf16[128,256], index: 2, kind: input, shape index: {}]   ;;  %s1186_s3 = inlined_call_operand.vmem [shape: f32[16,1], index: 3, kind: input, shape index: {}]   ;;  %s1187_s4 = inlined_call_operand.vmem [shape: f32[1,128], index: 4, kind: input, shape index: {}]   ;;  %s1188_s5 = inlined_call_operand.hbm [shape: f32[16,128], index: 5, kind: output, shape index: {}]  }
   0x1   :  { %10 = sst [smem:[#allocation2]] %s1183_s0 }
   0x2   :  { %11 = vsyncpa [#allocation4], 0 }
   0x3   :  { %13 = vsyncpa [#allocation4 + $0x1], 0 }
   0x4   :  { %14 = vsyncpa [#allocation5], 0 }
   0x5   :  { %16 = vsyncpa [#allocation5 + $0x1], 0  ;;  %s987_s20 = smov 0   ;;  %s989_s21 = smov 0  }
   0x6   :  { %s991_s22 = smov 0   ;;  %s993_s23 = smov 0  }
   0x7   :  { %s995_s24 = smov 0   ;;  %s997_s25 = smov 0  }
   0x8   :  { %s999_s26 = smov 0   ;;  %s1001_s27 = smov 0  }
   0x9   :  { %s1003_s0 = smov 0   ;;  %s1005_s28 = smov 0  }
   0xa   :  { %s1007_s29 = smov 0  }
   0xb LB: > { %1193 = sst [smem:[#allocation9_spill]] %s928_s25  ;;  %s619_s30 = sadd.s32 4294967295, %s948_s29   ;;  %s948_s29 = sphi %s1007_s29, %s22_s29   ;;  %s944_s28 = sphi %s1005_s28, %s1214_s28   ;;  %s940_s0 = sphi %s1003_s0, %s1213_s0   ;;  %s936_s27 = sphi %s1001_s27, %s1204_s27   ;;  %s932_s26 = sphi %s999_s26, %s1212_s26   ;;  %s928_s25 = sphi %s997_s25, %s1203_s25   ;;  %s924_s24 = sphi %s995_s24, %s1211_s24   ;;  %s920_s23 = sphi %s993_s23, %s1210_s23   ;;  %s916_s22 = sphi %s991_s22, %s1209_s22   ;;  %s912_s21 = sphi %s989_s21, %s1208_s21   ;;  %s908_s20 = sphi %s987_s20, %s1207_s20  }
   0xc   : > { %1194 = sst [smem:[#allocation10_spill]] %s944_s28  ;;  %s620_s6 = sadd.s32 4294967294, %s948_s29  }
   0xd   : > { %s34_s7 = sadd.s32 1, %s940_s0  ;;  %s41_s8 = sadd.s32 1, %s944_s28 }
   0xe   : > { %p35_p0 = scmp.ge.s32.totalorder %s34_s7, 2  ;;  %s99_s9 = sadd.s32 1, %s928_s25 }
   0xf   : > { %p106_p1 = scmp.ne.s32.totalorder %s928_s25, %s924_s24  ;;  %p107_p2 = scmp.eq.s32.totalorder %s948_s29, 0 }
  0x10   : > { %s1216_s7 = smov (%p35_p0, %s34_s7), 0  ;;  %s1218_s8 = smov (!%p35_p0, %s41_s8), %s944_s28 }
  0x11   : > { %1195 = sst [smem:[#allocation11_spill]] %s1216_s7  ;;  %s95_s10 = ssub.s32 %s940_s0, %s1216_s7 }
  0x12   : > { %p1053_p3 = por %p107_p2, %p106_p1  ;;  %p43_p4 = scmp.ge.s32.totalorder %s1218_s8, 2 }
  0x13   : > { %p97_p5 = scmp.eq.s32.totalorder %s95_s10, 0  ;;  %p112_p6 = scmp.ne.s32.totalorder %s924_s24, %s920_s23 }
  0x14   : > { %p113_p7 = scmp.eq.s32.totalorder %s619_s30, 0  ;;  %s1220_s8 = smov (%p43_p4, %s1218_s8), 0 }
  0x15   : > { %1197 = sst [smem:[#allocation12_spill]] %s1220_s8  ;;  %s174_s14 = ssub.s32 %s944_s28, %s1220_s8 }
  0x16   : > { %s1061_s12 = scalar_select %p97_p5, %s928_s25, %s99_s9  }
  0x17   : > { %p1063_p8 = por %p113_p7, %p112_p6  ;;  %p177_p9 = scmp.eq.s32.totalorder %s174_s14, 0 }
  0x18   : > { %1198 = sst [smem:[#allocation13_spill]] %s1061_s12  ;;  %s179_s15 = sadd.s32 1, %s916_s22 }
  0x19   : > { %p189_p10 = scmp.ne.s32.totalorder %s916_s22, %s912_s21  ;;  %p190_p11 = scmp.eq.s32.totalorder %s619_s30, 3 }
  0x1a   : > { %s1073_s16 = scalar_select %p177_p9, %s916_s22, %s179_s15  }
  0x1b   : > { %p1075_p12 = por %p190_p11, %p189_p10  ;;  %p195_p13 = scmp.ne.s32.totalorder %s912_s21, %s908_s20 }
  0x1c   : > { %p196_p0 = scmp.eq.s32.totalorder %s620_s6, 3  ;;  %p692_p1 = scmp.lt.s32.totalorder %s948_s29, 4 }
  0x1d   : > { %s236_s18 = sand.u32 1, %s928_s25   ;;  %s625_s9 = sshll.u32 %s940_s0, 2 }
  0x1e   : > { %p1083_p2 = por %p196_p0, %p195_p13  ;;  %s624_s23 = sshll.u32 %s236_s18, 6 }
  0x1f   : > { %s247_s14 = scalar_lea.hbm %s1185_s2, %s625_s9  ;;  %s240_s8 = scalar_lea.vmem [#allocation3], %s624_s23 }
  0x20   : > { %s248_s15 = sshll.u32 %s247_s14, 4  ;;  %s250_s7 = sshll.u32 %s240_s8, 4  ;;  %s249_s15 = int_to_ptr.hbm [resolvable:$true] %s248_s15  ;;  %s251_s7 = int_to_ptr.vmem [resolvable:$true] %s250_s7 }
  0x21   : > { %p685_p4 = pnand %p692_p1, %p1053_p3  ;;  %p626_p5 = scmp.ge.s32.totalorder %s948_s29, 1 }
  0x22   : > { %s237_s6 = scalar_lea.sflag [#allocation4], %s236_s18  ;;  %s950_s28 = smov 128  }
  0x23   : > { %s951_s12 = smov 64   ;;  %s952_s25 = smov 4  }
  0x24   : > { %687 = dma.hbm_to_vmem [thread:$0]  (!%p685_p4), %s249_s15, 1024, %s251_s7, %s237_s6, %s950_s28, %s951_s12, %s952_s25  }
  0x25   : > { %p265_p6 = scmp.lt.s32.totalorder %s948_s29, 5 }
  0x27   : > { %p266_p7 = pnand %p626_p5, %p265_p6 }
  0x28   : > { %s271_s30 = sand.u32 (!%p266_p7), 1, %s924_s24  }
  0x29   : > { %269 = sbr.rel (%p266_p7) target bundleno = 449 (0x1c1), region = 40  ;;  %s627_s9 = sshll.u32 (!%p266_p7), %s271_s30, 6 }
  0x2a   : > { %s272_s10 = scalar_lea.sflag (!%p266_p7), [#allocation4], %s271_s30  ;;  %s275_s23 = scalar_lea.vmem (!%p266_p7), [#allocation3], %s627_s9 }
  0x2e   : > { %899 = dma.done.wait (%p1063_p8), %s272_s10, 1024  }
  0x2f   : > { %901 = vsyncadd (%p1063_p8), %s272_s10, 4294966272  ;;  %s315_s8 = sand.u32 1, %s912_s21   ;;  %p318_p3 = scmp.lt.s32.totalorder %s936_s27, 1  ;;  %v679_v0 = vld [vmem:[%s275_s23 + $0x38] sm:$0xff]  ;;  %v678_v1 = vld [vmem:[%s275_s23 + $0x30] sm:$0xff] }
  0x30   : > { %s628_s25 = sshll.u32 %s315_s8, 3  ;;  %399 = vmatpush.bf16.xpose.msra.mxu0 %v679_v0  ;;  %v677_v2 = vld [vmem:[%s275_s23 + $0x28] sm:$0xff]  ;;  %v676_v3 = vld [vmem:[%s275_s23 + $0x20] sm:$0xff]  ;;  %v675_v4 = vld [vmem:[%s275_s23 + $0x18] sm:$0xff]  ;;  %p320_p8 = scmp.lt.s32.totalorder %s932_s26, 1 }
  0x31   : > { %s319_s28 = scalar_select %p318_p3, %s936_s27, 1  ;;  %v674_v5 = vld [vmem:[%s275_s23 + $0x10] sm:$0xff]  ;;  %v673_v6 = vld [vmem:[%s275_s23 + $0x8] sm:$0xff]  ;;  %v672_v7 = vld [vmem:[%s275_s23] sm:$0xff] }
  0x32   : > { %s321_s13 = scalar_select %p320_p8, %s932_s26, 1 }
  0x33   : > { %s631_s7 = sshll.u32 %s319_s28, 3  ;;  %s629_s14 = sshll.u32 %s319_s28, 1 }
  0x34   : > { %s1108_s18 = scalar_lea.vmem %s1186_s3, %s631_s7  ;;  %s323_s15 = sadd.s32 %s629_s14, %s321_s13 }
  0x35   : > { %s630_s6 = sshll.u32 %s323_s15, 2  ;;  %s1115_s7 = scalar_lea.vmem [#allocation6], %s628_s25 }
  0x36   : > { %s325_s10 = scalar_lea.vmem %s1184_s1, %s630_s6  ;;  %p664_p9 = scmp.ne.s32.totalorder %s932_s26, 0 }
  0x37   : > { %v334_v8 = vld [vmem:[%s325_s10] sm:$0xf] }
  0x38   : > { %400 = vmatpush.bf16.xpose.msra.mxu0 %v678_v1 }
  0x40   : > { %401 = vmatpush.bf16.xpose.msra.mxu0 %v677_v2 }
  0x48   : > { %402 = vmatpush.bf16.xpose.msra.mxu0 %v676_v3 }
  0x50   : > { %403 = vmatpush.bf16.xpose.msra.mxu0 %v675_v4 }
  0x58   : > { %404 = vmatpush.bf16.xpose.msra.mxu0 %v674_v5 }
  0x60   : > { %405 = vmatpush.bf16.xpose.msra.mxu0 %v673_v6 }
  0x68   : > { %406 = vmatpush.bf16.xpose.msra.mxu0 %v672_v7 }
  0x6f   : > { %407 = vmatmul.bf16.vlgmr.msra.gmra.mxu0 %v334_v8 }
  0xec   : > { %v408_v9 = vpop.f32.mrf.mxu0 }
  0xf0   : > { %415 = sbr.rel (%p664_p9) target bundleno = 246 (0xf6), region = 48 }
  0xf4   : > { %v410_v10 = vpop.f32.mrf.mxu0 }
  0xf5   : > { %416 = vst [vmem:[%s1115_s7] sm:$0xff] %v408_v9 }
  0xf6 PF: > { %p665_p10 = scmp.eq.s32.totalorder %s932_s26, 0 }
  0xf8   : > { %420 = sbr.rel (%p665_p10) target bundleno = 257 (0x101), region = 52 }
  0xfd   : > { %v421_v11 = vld [vmem:[%s1115_s7] sm:$0xff] }
  0xfe   : > { %v422_v12 = vadd.f32 %v421_v11, %v408_v9 }
 0x100   : > { %423 = vst [vmem:[%s1115_s7] sm:$0xff] %v422_v12 }
 0x101 PF: > { %p666_p11 = scmp.ne.s32.totalorder %s932_s26, 1 }
 0x102   : > { %s437_s23 = sld [smem:[#allocation2]] (!%p666_p11) }
 0x103   : > { %427 = sbr.rel (%p666_p11) target bundleno = 434 (0x1b2), region = 56 }
 0x108   : > { %v428_v13 = vld [vmem:[%s1108_s18] sm:$0xff]  ;;  %v953_v14 = vmov 0   ;;  %v438_v22 = vstv %s437_s23 }
 0x109   : > { %786 = vset.pattern.permute.xlu0 %v953_v14  ;;  %v429_v15 = vmax.f32 %v428_v13, 1e-06  ;;  %v460_v39 = vld [vmem:[%s1115_s7] sm:$0xff] }
 0x10a   : > { %v787_v40 = vld [vmem:[%s1187_s4] ss:$0 sm:$0xff] }
 0x10b   : > { %v430_v16 = vmin.f32 %v429_v15, 0.999999 }
 0x10d   : > { %788 = vlog2.f32 %v430_v16  ;;  %v433_v17 = vsub.f32 1.0, %v430_v16 }
 0x10f   : > { %790 = vlog2.f32 %v433_v17 }
 0x113   : > { %v789_v18 = vpop.eup %788 }
 0x114   : > { %v432_v19 = vmul.f32 0.6931472, %v789_v18 }
 0x115   : > { %v791_v20 = vpop.eup %790 }
 0x116   : > { %v435_v21 = vmul.f32 0.6931472, %v791_v20 }
 0x118   : > { %v436_v23 = vsub.f32 %v432_v19, %v435_v21 }
 0x11a   : > { %v439_v24 = vsub.f32 %v436_v23, %v438_v22 }
 0x11c   : > { %v667_v25 = vmul.f32 -10.0, %v439_v24 }
 0x11e   : > { %v442_v26 = vmul.f32 1.442695, %v667_v25 }
 0x120   : > { %792 = vpow2.f32 %v442_v26 }
 0x126   : > { %v793_v27 = vpop.eup %792 }
 0x127   : > { %v444_v28 = vadd.f32 1.0, %v793_v27 }
 0x129   : > { %794 = vrcp.f32 %v444_v28  ;;  %v456_v31 = vand.u32 2147483648, %v444_v28  ;;  %vm450_vm0 = vweird.f32 %v444_v28  ;;  %v454_v33 = vand.u32 2147483647, %v444_v28 }
 0x12b   : > { %v457_v35 = vor.u32 1.1754944e-38, %v456_v31  ;;  %vm455_vm3 = vcmp.eq.f32.partialorder %v454_v33, 8.507059e+37 }
 0x12f   : > { %v795_v29 = vpop.eup %794 }
 0x130   : > { %v446_v30 = vmul.f32 %v795_v29, %v444_v28  ;;  %vm451_vm1 = vweird.f32 %v795_v29 }
 0x131   : > { %vm452_vm2 = vmor %vm450_vm0, %vm451_vm1 }
 0x132   : > { %v447_v32 = vsub.f32 1.0, %v446_v30 }
 0x134   : > { %v448_v34 = vmul.f32 %v795_v29, %v447_v32 }
 0x136   : > { %v449_v36 = vadd.f32 %v795_v29, %v448_v34 }
 0x138   : > { %v453_v37 = vsel %vm452_vm2, %v795_v29, %v449_v36 }
 0x139   : > { %v458_v38 = vsel %vm455_vm3, %v457_v35, %v453_v37 }
 0x13a   : > { %463 = vperm.xlu0 %786, %v458_v38  }
 0x1ac   : > { %v464_v41 = vpop.permute.xlu0 %463 }
 0x1ad   : > { %v466_v42 = vmul.f32 %v464_v41, %v460_v39 }
 0x1af   : > { %v471_v43 = vadd.f32 %v787_v40, %v466_v42 }
 0x1b1   : > { %472 = vst [vmem:[%s1115_s7] sm:$0xff] %v471_v43 }
 0x1b2 PF: > { %s669_s28 = sshll.u32 %s936_s27, 3  ;;  %s487_s13 = sshll.u32 %s1115_s7, 4  ;;  %s488_s13 = int_to_ptr.vmem [resolvable:$true] %s487_s13 }
 0x1b3   : > { %s485_s18 = scalar_lea.hbm %s1188_s5, %s669_s28  ;;  %s474_s15 = scalar_lea.sflag [#allocation5], %s315_s8 }
 0x1b4   : > { %s489_s14 = sshll.u32 %s485_s18, 4  ;;  %s846_s27 = scalar_lea.hbm %s1188_s5, 16  ;;  %s490_s14 = int_to_ptr.hbm [resolvable:$true] %s489_s14 }
 0x1b5   : > { %s840_s6 = sshra.s32 %s490_s14, 4  ;;  %s841_s6 = int_to_ptr.hbm [resolvable:$true] %s840_s6 }
 0x1b6   : > { %s842_s30 = scalar_lea.hbm %s841_s6, 8  ;;  %p847_p4 = scmp.lt.s32.totalorder %s841_s6, %s1188_s5 }
 0x1b7   : > { %p843_p13 = scmp.ne.s32.totalorder %s841_s6, %s842_s30  ;;  %p848_p5 = scmp.lt.s32.totalorder %s846_s27, %s842_s30 }
 0x1b9   : > { %p844_p0 = pnand %p843_p13, %p1075_p12  ;;  %p849_p6 = por %p848_p5, %p847_p4 }
 0x1bb   : > { %p845_p1 = pneg %p844_p0 }
 0x1bd   : > { %p850_p7 = pnand %p849_p6, %p845_p1 }
 0x1bf   : > { %853 = shalt.err (!%p850_p7)
}
 0x1c0   : > { %682 = dma.vmem_to_hbm [thread:$0]  (%p1075_p12), %s488_s13, 128, %s490_s14, %s474_s15  }
 0x1c1 PF: > { %p693_p3 = scmp.ge.s32.totalorder %s948_s29, 2  ;;  %s501_s8 = sand.u32 1, %s908_s20  }
 0x1c2   : > { %s502_s7 = scalar_lea.sflag [#allocation5], %s501_s8 }
 0x1c3   : > { %p689_p8 = pnand %p693_p3, %p1083_p2 }
 0x1c5   : > { %p690_p9 = pneg %p689_p8 }
 0x1c7   : > { %903 = dma.done.wait (%p690_p9), %s502_s7, 128  }
 0x1c8   : > { %905 = vsyncadd (%p690_p9), %s502_s7, 4294967168  ;;  %s22_s29 = sadd.s32 1, %s948_s29   ;;  %s1202_s17 = sld [smem:[#allocation9_spill]] }
 0x1c9   : > { %p19_p10 = scmp.ge.s32.totalorder %s22_s29, 6   ;;  %s1203_s25 = sld [smem:[#allocation13_spill]] }
 0x1ca   : > { %s1204_s27 = sld [smem:[#allocation10_spill]]  ;;  %s1207_s20 = smov %s912_s21 }
 0x1cb   : > { %s1205_s28 = sld [smem:[#allocation11_spill]]  ;;  %s1208_s21 = smov %s916_s22 }
 0x1cc   : > { %s1206_s11 = sld [smem:[#allocation12_spill]]  ;;  %s1209_s22 = smov %s1073_s16 }
 0x1cd   : > { %s1210_s23 = smov %s924_s24  ;;  %s1212_s26 = smov %s940_s0 }
 0x1ce   : > { %s1211_s24 = smov %s1202_s17  ;;  %21 = sbr.rel (!%p19_p10) target bundleno = 11 (0xb), region = 106 }
 0x1d1   : > { %s1213_s0 = smov %s1205_s28 }
 0x1d2   : > { %s1214_s28 = smov %s1206_s11 }
 0x1d3   :  { %508 = vsyncpa [#allocation4], 1 }
 0x1d4   :  { %510 = vsyncpa [#allocation4 + $0x1], 1 }
 0x1d5   :  { %511 = vsyncpa [#allocation5], 1 }
 0x1d6   :  { %513 = vsyncpa [#allocation5 + $0x1], 1 }

</bundles_post_ra>
